<compile_context>
chip_gen: v6e
topology: v6e:2x2x1
jax: 0.10.0
libtpu: 0.0.40
codegen_flags: <defaults>
</compile_context>

<pallas_src>
import functools

import jax
import jax.numpy as jnp
from jax import lax
from jax.experimental import pallas as pl
from jax.experimental.pallas import tpu as pltpu

MASK_FILL = -1e9  # matches torch masked_fill_(attn_mask, -1000000000.0)


def _sdpa_kernel(q_ref, k_ref, v_ref, mask_ref, ctx_ref, attn_ref=None, *, scale):
    # q_ref:    (1, tq,  d_k)   query tile of one (batch, head)
    # k_ref:    (1, S_k, d_k)   full keys of that head
    # v_ref:    (1, S_k, d_v)   full values of that head
    # mask_ref: (1, tq,  S_k)   int8 mask (nonzero == masked out)
    #
    # Fold 1/sqrt(d_k) into Q (tq*d_k multiplies instead of tq*S_k on scores)
    # and keep native dtype so bf16 callers hit the bf16 MXU path.
    q = q_ref[0] * jnp.asarray(scale, dtype=q_ref.dtype)
    k = k_ref[0]
    v = v_ref[0]
    mask = mask_ref[0].astype(jnp.int32) != 0

    # scores = (Q*scale) @ K^T, contracting on d_k (no transposed copy of K);
    # f32 accumulation on the MXU regardless of input dtype.
    scores = lax.dot_general(
        q, k, (((1,), (1,)), ((), ())),
        preferred_element_type=jnp.float32,
    )
    scores = jnp.where(mask, jnp.float32(MASK_FILL), scores)

    # Numerically-stable softmax over the key axis; intermediates stay f32
    # (required on v5e, harmless elsewhere).
    m = jnp.max(scores, axis=-1, keepdims=True)
    p = jnp.exp(scores - m)                       # unnormalized probabilities
    denom = jnp.sum(p, axis=-1, keepdims=True)
    inv = pl.reciprocal(denom, approx=True)       # EUP slot (otherwise idle)

    # Deferred normalization: scale the (tq, d_v) context, not the (tq, S_k)
    # probs.  Cast p to V's dtype so the PV matmul also runs bf16 on the MXU
    # when V is bf16 (f32 accumulation).
    ctx = jnp.dot(p.astype(v_ref.dtype), v, preferred_element_type=jnp.float32)
    ctx_ref[0] = (ctx * inv).astype(ctx_ref.dtype)

    if attn_ref is not None:
        attn_ref[0] = (p * inv).astype(attn_ref.dtype)


def _vmem_budget_bytes():
    # 3/4 of physical VMEM: ~96 MiB on v5e/v6e (128 MiB), ~48 MiB on v7x (64 MiB).
    try:
        cap = pltpu.get_tpu_info().vmem_capacity_bytes
    except Exception:
        cap = 64 * 1024 * 1024  # conservative (v7x-sized) fallback
    return int(cap * 3 // 4)


def _pick_tq(S_q, S_k, d_k, d_v, itemsize, sublane, return_attn, budget):
    """Largest query tile whose double-buffered live set fits the VMEM budget."""

    def fits(t):
        in_b = (t * d_k + S_k * d_k + S_k * d_v) * itemsize + t * S_k  # + int8 mask
        out_b = t * d_v * itemsize + (t * S_k * itemsize if return_attn else 0)
        f32_tmp = (2 * t * S_k + t * d_v) * 4  # scores/probs + context accumulators
        return 2 * (in_b + out_b) + f32_tmp <= budget

    for t in (512, 256, 128, 64, 32, 16, 8):
        if t <= S_q and S_q % t == 0 and t % sublane == 0 and fits(t):
            return t
    if S_q <= 512 and fits(S_q):
        return S_q  # full-extent block: exempt from the sublane-multiple rule
    # TODO(synk): add a key-axis grid dimension with online softmax (flash-style)
    # for very long S_k where even a minimal query tile does not fit VMEM.
    return S_q if S_q % sublane else sublane


def scaled_dot_product_attention(Q, K, V, attn_mask, *, tq=None, return_attn=True):
    """Q: [B,H,S_q,d_k], K: [B,H,S_k,d_k], V: [B,H,S_k,d_v],
    attn_mask: broadcastable to [B,H,S_q,S_k], truthy == masked out.
    Returns (context, attn) if return_attn else context."""
    B, H, S_q, d_k = Q.shape
    _, _, S_k, d_v = V.shape
    BH = B * H

    itemsize = jnp.dtype(Q.dtype).itemsize
    sublane = {4: 8, 2: 16, 1: 32}.get(itemsize, 8)  # avoid packed-layout padding
    budget = _vmem_budget_bytes()
    if tq is None:
        tq = _pick_tq(S_q, S_k, d_k, d_v, itemsize, sublane, return_attn, budget)
    assert S_q % tq == 0, "query length must be divisible by the query tile"
    nq = S_q // tq
    scale = float(d_k) ** -0.5  # folded into Q inside the kernel

    q2 = Q.reshape(BH, S_q, d_k)
    k2 = K.reshape(BH, S_k, d_k)
    v2 = V.reshape(BH, S_k, d_v)
    # int8 mask: 4x less HBM traffic than the previous int32 mask.
    m2 = jnp.broadcast_to(attn_mask, (B, H, S_q, S_k)).reshape(BH, S_q, S_k)
    m2 = m2.astype(jnp.int8)

    kernel = functools.partial(_sdpa_kernel, scale=scale)

    out_shape = [jax.ShapeDtypeStruct((BH, S_q, d_v), Q.dtype)]
    out_specs = [pl.BlockSpec((1, tq, d_v), lambda b, i: (b, i, 0))]
    if return_attn:
        out_shape.append(jax.ShapeDtypeStruct((BH, S_q, S_k), Q.dtype))
        out_specs.append(pl.BlockSpec((1, tq, S_k), lambda b, i: (b, i, 0)))

    outs = pl.pallas_call(
        kernel,
        out_shape=out_shape,
        grid_spec=pltpu.PrefetchScalarGridSpec(
            num_scalar_prefetch=0,
            grid=(BH, nq),
            in_specs=[
                pl.BlockSpec((1, tq, d_k), lambda b, i: (b, i, 0)),   # Q tile
                pl.BlockSpec((1, S_k, d_k), lambda b, i: (b, 0, 0)),  # K (full head)
                pl.BlockSpec((1, S_k, d_v), lambda b, i: (b, 0, 0)),  # V (full head)
                pl.BlockSpec((1, tq, S_k), lambda b, i: (b, i, 0)),   # mask tile (int8)
            ],
            out_specs=out_specs,
        ),
        compiler_params=pltpu.CompilerParams(
            dimension_semantics=("parallel", "parallel"),  # megacore splits B*H work
            vmem_limit_bytes=budget,
        ),
    )(q2, k2, v2, m2)

    context = outs[0].reshape(B, H, S_q, d_v)
    if return_attn:
        return context, outs[1].reshape(B, H, S_q, S_k)
    return context


def reference_sdpa(Q, K, V, attn_mask):
    d_k = Q.shape[-1]
    scores = jnp.einsum(
        "bhqd,bhkd->bhqk", Q.astype(jnp.float32), K.astype(jnp.float32)
    ) / jnp.sqrt(jnp.float32(d_k))
    scores = jnp.where(attn_mask, jnp.float32(MASK_FILL), scores)
    attn = jax.nn.softmax(scores, axis=-1)
    context = jnp.einsum("bhqk,bhkd->bhqd", attn, V.astype(jnp.float32))
    return context, attn


if __name__ == "__main__":
    # small shapes consistent with the module (d_k = d_v = 64 like the reference)
    B, H, S_q, S_k, d_k, d_v = 2, 4, 8, 8, 64, 64

    key = jax.random.PRNGKey(0)
    kq, kk, kv = jax.random.split(key, 3)
    Q = jax.random.normal(kq, (B, H, S_q, d_k), dtype=jnp.float32)
    K = jax.random.normal(kk, (B, H, S_k, d_k), dtype=jnp.float32)
    V = jax.random.normal(kv, (B, H, S_k, d_v), dtype=jnp.float32)

    # boolean "subsequent" (causal) mask, broadcast to every batch/head
    causal = jnp.triu(jnp.ones((S_q, S_k), dtype=jnp.bool_), k=1)
    attn_mask = jnp.broadcast_to(causal, (B, H, S_q, S_k))

    ctx_ref, attn_ref = reference_sdpa(Q, K, V, attn_mask)

    # Full PyTorch-equivalent path: returns (context, attn).
    context, attn = scaled_dot_product_attention(Q, K, V, attn_mask)
    context = jax.block_until_ready(context)
    attn = jax.block_until_ready(attn)
    assert context.shape == (B, H, S_q, d_v)
    assert attn.shape == (B, H, S_q, S_k)
    # approx-reciprocal softmax denominator -> slightly looser tolerance
    assert jnp.allclose(attn, attn_ref, atol=5e-3, rtol=5e-3), "attn mismatch vs reference"
    assert jnp.allclose(context, ctx_ref, atol=5e-3, rtol=5e-3), "context mismatch vs reference"

    # Context-only fast path (drops the O(S_q*S_k) attn writeback).
    ctx_only = jax.block_until_ready(
        scaled_dot_product_attention(Q, K, V, attn_mask, return_attn=False))
    assert jnp.allclose(ctx_only, ctx_ref, atol=5e-3, rtol=5e-3), "ctx-only mismatch"

    # bf16 operands exercise the bf16 MXU path (f32 accumulation + f32 softmax).
    Qb, Kb, Vb = (x.astype(jnp.bfloat16) for x in (Q, K, V))
    ctx_ref_b, _ = reference_sdpa(Qb.astype(jnp.float32), Kb.astype(jnp.float32),
                                  Vb.astype(jnp.float32), attn_mask)
    ctx_b = jax.block_until_ready(
        scaled_dot_product_attention(Qb, Kb, Vb, attn_mask, return_attn=False))
    assert jnp.allclose(ctx_b.astype(jnp.float32), ctx_ref_b, atol=5e-2, rtol=5e-2), \
        "bf16 context mismatch vs reference"

    print("KERNEL_OK")
</pallas_src>

<mosaic_0001>
module attributes {stable_mosaic.version = 11 : i64} {
  func.func @_sdpa_kernel(%arg0: i32, %arg1: i32, %arg2: memref<1x8x64xf32, #tpu.memory_space<vmem>>, %arg3: memref<1x8x64xf32, #tpu.memory_space<vmem>>, %arg4: memref<1x8x64xf32, #tpu.memory_space<vmem>>, %arg5: memref<1x8x8xi8, #tpu.memory_space<vmem>>, %arg6: memref<1x8x64xf32, #tpu.memory_space<vmem>>, %arg7: memref<1x8x8xf32, #tpu.memory_space<vmem>>) attributes {dimension_semantics = [#tpu.dimension_semantics<parallel>, #tpu.dimension_semantics<parallel>], iteration_bounds = array<i64: 8, 1>, scalar_prefetch = 0 : i64, scratch_operands = 0 : i64, tpu.core_type = #tpu.core_type<tc>, window_params = [{transform_indices = @transform_0, window_bounds = array<i64: 1, 8, 64>}, {transform_indices = @transform_1, window_bounds = array<i64: 1, 8, 64>}, {transform_indices = @transform_2, window_bounds = array<i64: 1, 8, 64>}, {transform_indices = @transform_3, window_bounds = array<i64: 1, 8, 8>}, {transform_indices = @transform_4, window_bounds = array<i64: 1, 8, 64>}, {transform_indices = @transform_5, window_bounds = array<i64: 1, 8, 8>}]} {
    %c0 = arith.constant 0 : index
    %c0_0 = arith.constant 0 : index
    %c0_1 = arith.constant 0 : index
    %0 = vector.load %arg2[%c0, %c0_0, %c0_1] : memref<1x8x64xf32, #tpu.memory_space<vmem>>, vector<1x8x64xf32>
    %1 = vector.shape_cast %0 : vector<1x8x64xf32> to vector<8x64xf32>
    %cst = arith.constant 1.250000e-01 : f32
    %2 = vector.broadcast %cst : f32 to vector<8x64xf32>
    %3 = arith.mulf %1, %2 : vector<8x64xf32>
    %c0_2 = arith.constant 0 : index
    %c0_3 = arith.constant 0 : index
    %c0_4 = arith.constant 0 : index
    %4 = vector.load %arg3[%c0_2, %c0_3, %c0_4] : memref<1x8x64xf32, #tpu.memory_space<vmem>>, vector<1x8x64xf32>
    %5 = vector.shape_cast %4 : vector<1x8x64xf32> to vector<8x64xf32>
    %c0_5 = arith.constant 0 : index
    %c0_6 = arith.constant 0 : index
    %c0_7 = arith.constant 0 : index
    %6 = vector.load %arg4[%c0_5, %c0_6, %c0_7] : memref<1x8x64xf32, #tpu.memory_space<vmem>>, vector<1x8x64xf32>
    %7 = vector.shape_cast %6 : vector<1x8x64xf32> to vector<8x64xf32>
    %c0_8 = arith.constant 0 : index
    %c0_9 = arith.constant 0 : index
    %c0_10 = arith.constant 0 : index
    %8 = vector.load %arg5[%c0_8, %c0_9, %c0_10] : memref<1x8x8xi8, #tpu.memory_space<vmem>>, vector<1x8x8xi8>
    %9 = vector.shape_cast %8 : vector<1x8x8xi8> to vector<8x8xi8>
    %10 = arith.extsi %9 : vector<8x8xi8> to vector<8x8xi32>
    %c0_i32 = arith.constant 0 : i32
    %11 = vector.broadcast %c0_i32 : i32 to vector<8x8xi32>
    %12 = arith.cmpi ne, %10, %11 : vector<8x8xi32>
    %cst_11 = arith.constant dense<0.000000e+00> : vector<8x8xf32>
    %13 = tpu.matmul %3, %5, %cst_11 {dimension_numbers = #tpu.dot_dimension_numbers<[1], [1], [0], [0], [0, 0, 1, 0], [], []>} : vector<8x64xf32>, vector<8x64xf32>, vector<8x8xf32> -> vector<8x8xf32>
    %cst_12 = arith.constant -1.000000e+09 : f32
    %14 = vector.broadcast %cst_12 : f32 to vector<8x8xf32>
    %15 = arith.select %12, %14, %13 : vector<8x8xi1>, vector<8x8xf32>
    %cst_13 = arith.constant dense<0xFF800000> : vector<8xf32>
    %16 = vector.multi_reduction <maximumf>, %15, %cst_13 [1] : vector<8x8xf32> to vector<8xf32>
    %17 = vector.shape_cast %16 : vector<8xf32> to vector<8x1xf32>
    %18 = vector.broadcast %17 : vector<8x1xf32> to vector<8x8xf32>
    %19 = arith.subf %15, %18 : vector<8x8xf32>
    %20 = math.exp %19 : vector<8x8xf32>
    %cst_14 = arith.constant dense<0.000000e+00> : vector<8xf32>
    %21 = vector.multi_reduction <add>, %20, %cst_14 [1] : vector<8x8xf32> to vector<8xf32>
    %22 = vector.shape_cast %21 : vector<8xf32> to vector<8x1xf32>
    %23 = tpu.reciprocal %22 {approx = true} : vector<8x1xf32> -> vector<8x1xf32>
    %cst_15 = arith.constant dense<0.000000e+00> : vector<8x64xf32>
    %24 = tpu.matmul %20, %7, %cst_15 {dimension_numbers = #tpu.dot_dimension_numbers<[1], [0], [0], [1], [0, 0, 1, 1], [], []>} : vector<8x8xf32>, vector<8x64xf32>, vector<8x64xf32> -> vector<8x64xf32>
    %25 = vector.broadcast %23 : vector<8x1xf32> to vector<8x64xf32>
    %26 = arith.mulf %24, %25 : vector<8x64xf32>
    %c0_16 = arith.constant 0 : index
    %c0_17 = arith.constant 0 : index
    %c0_18 = arith.constant 0 : index
    %27 = vector.load %arg6[%c0_16, %c0_17, %c0_18] : memref<1x8x64xf32, #tpu.memory_space<vmem>>, vector<1x8x64xf32>
    %28 = vector.shape_cast %27 : vector<1x8x64xf32> to vector<8x64xf32>
    %29 = vector.shape_cast %26 : vector<8x64xf32> to vector<1x8x64xf32>
    tpu.vector_store %arg6[%c0_16, %c0_17, %c0_18], %29 {strides = array<i32>} : memref<1x8x64xf32, #tpu.memory_space<vmem>>, vector<1x8x64xf32>,
    %30 = vector.broadcast %23 : vector<8x1xf32> to vector<8x8xf32>
    %31 = arith.mulf %20, %30 : vector<8x8xf32>
    %c0_19 = arith.constant 0 : index
    %c0_20 = arith.constant 0 : index
    %c0_21 = arith.constant 0 : index
    %32 = vector.load %arg7[%c0_19, %c0_20, %c0_21] : memref<1x8x8xf32, #tpu.memory_space<vmem>>, vector<1x8x8xf32>
    %33 = vector.shape_cast %32 : vector<1x8x8xf32> to vector<8x8xf32>
    %34 = vector.shape_cast %31 : vector<8x8xf32> to vector<1x8x8xf32>
    tpu.vector_store %arg7[%c0_19, %c0_20, %c0_21], %34 {strides = array<i32>} : memref<1x8x8xf32, #tpu.memory_space<vmem>>, vector<1x8x8xf32>,
    return
  }
  func.func @transform_0(%arg0: i32, %arg1: i32) -> (i32, i32, i32) {
    %c0_i32 = arith.constant 0 : i32
    %c0_i32_0 = arith.constant 0 : i32
    return %arg0, %arg1, %c0_i32 : i32, i32, i32
  }
  func.func @transform_1(%arg0: i32, %arg1: i32) -> (i32, i32, i32) {
    %c0_i32 = arith.constant 0 : i32
    %c0_i32_0 = arith.constant 0 : i32
    %c0_i32_1 = arith.constant 0 : i32
    return %arg0, %c0_i32, %c0_i32_0 : i32, i32, i32
  }
  func.func @transform_2(%arg0: i32, %arg1: i32) -> (i32, i32, i32) {
    %c0_i32 = arith.constant 0 : i32
    %c0_i32_0 = arith.constant 0 : i32
    %c0_i32_1 = arith.constant 0 : i32
    return %arg0, %c0_i32, %c0_i32_0 : i32, i32, i32
  }
  func.func @transform_3(%arg0: i32, %arg1: i32) -> (i32, i32, i32) {
    %c0_i32 = arith.constant 0 : i32
    %c0_i32_0 = arith.constant 0 : i32
    return %arg0, %arg1, %c0_i32 : i32, i32, i32
  }
  func.func @transform_4(%arg0: i32, %arg1: i32) -> (i32, i32, i32) {
    %c0_i32 = arith.constant 0 : i32
    %c0_i32_0 = arith.constant 0 : i32
    return %arg0, %arg1, %c0_i32 : i32, i32, i32
  }
  func.func @transform_5(%arg0: i32, %arg1: i32) -> (i32, i32, i32) {
    %c0_i32 = arith.constant 0 : i32
    %c0_i32_0 = arith.constant 0 : i32
    return %arg0, %arg1, %c0_i32 : i32, i32, i32
  }
}

</mosaic_0001>

<bundles_post_ra>
// kernel: tpu_custom_call.1
= control target key start
LH: loop header
LB: loop body
LE: loop exit
PB: predicated region body
PF: predicated region fallthrough
CT: control target
= control target key end

     0   :  { %s1415_s0 = inlined_call_operand.hbm [shape: f32[8,8,64], index: 0, kind: input, shape index: {}]   ;;  %s1416_s1 = inlined_call_operand.hbm [shape: f32[8,8,64], index: 1, kind: input, shape index: {}]   ;;  %s1417_s2 = inlined_call_operand.hbm [shape: f32[8,8,64], index: 2, kind: input, shape index: {}]   ;;  %s1418_s3 = inlined_call_operand.hbm [shape: s8[8,8,8], index: 3, kind: input, shape index: {}]   ;;  %s1419_s4 = inlined_call_operand.hbm [shape: f32[8,8,64], index: 4, kind: output, shape index: {0}]   ;;  %s1420_s5 = inlined_call_operand.hbm [shape: f32[8,8,8], index: 5, kind: output, shape index: {1}]  }
   0x1   :  { %1425 = sst [smem:[#allocation23_spill]] %s1416_s1 }
   0x2   :  { %11 = vsyncpa [#allocation3], 0 }
   0x3   :  { %13 = vsyncpa [#allocation3 + $0x1], 0 }
   0x4   :  { %14 = vsyncpa [#allocation6], 0 }
   0x5   :  { %16 = vsyncpa [#allocation6 + $0x1], 0 }
   0x6   :  { %17 = vsyncpa [#allocation9], 0 }
   0x7   :  { %19 = vsyncpa [#allocation9 + $0x1], 0 }
   0x8   :  { %20 = vsyncpa [#allocation4], 0 }
   0x9   :  { %22 = vsyncpa [#allocation4 + $0x1], 0 }
   0xa   :  { %23 = vsyncpa [#allocation12], 0 }
   0xb   :  { %25 = vsyncpa [#allocation12 + $0x1], 0  ;;  %s1168_s18 = smov 0   ;;  %s1170_s19 = smov 0  }
   0xc   :  { %s1172_s20 = smov 0   ;;  %s1174_s21 = smov 0  }
   0xd   :  { %s1176_s22 = smov 0   ;;  %s1178_s23 = smov 0  }
   0xe LB: > { %1426 = sst [smem:[#allocation18_spill]] %s1108_s18  ;;  %s1199_s24 = sadd.s32 4294967295, %s1128_s23   ;;  %s1128_s23 = sphi %s1178_s23, %s31_s23   ;;  %s1124_s22 = sphi %s1176_s22, %s1446_s22   ;;  %s1120_s21 = sphi %s1174_s21, %s1445_s21   ;;  %s1116_s20 = sphi %s1172_s20, %s1441_s20   ;;  %s1112_s19 = sphi %s1170_s19, %s1444_s19   ;;  %s1108_s18 = sphi %s1168_s18, %s1443_s18  }
   0xf   : > { %1427 = sst [smem:[#allocation19_spill]] %s1116_s20  ;;  %s769_s25 = sadd.s32 4294967294, %s1128_s23  }
  0x10   : > { %s43_s26 = sadd.s32 1, %s1124_s22  ;;  %s52_s27 = sadd.s32 1, %s1116_s20 }
  0x11   : > { %p45_p0 = scmp.ge.s32.totalorder %s43_s26, 8  ;;  %p59_p1 = scmp.ne.s32.totalorder %s1116_s20, %s1112_s19 }
  0x12   : > { %p60_p2 = scmp.eq.s32.totalorder %s1128_s23, 0  ;;  %p65_p3 = scmp.ne.s32.totalorder %s1112_s19, %s1108_s18 }
  0x13   : > { %s1448_s26 = smov (%p45_p0, %s43_s26), 0  ;;  %p66_p5 = scmp.eq.s32.totalorder %s1199_s24, 0 }
  0x14   : > { %1428 = sst [smem:[#allocation20_spill]] %s1448_s26  ;;  %p1211_p4 = por %p60_p2, %p59_p1 }
  0x15   : > { %s47_s29 = ssub.s32 %s1124_s22, %s1448_s26  ;;  %p171_p6 = scmp.eq.s32.totalorder %s1199_s24, 7 }
  0x16   : > { %p50_p7 = scmp.eq.s32.totalorder %s47_s29, 0  ;;  %p1219_p8 = por %p66_p5, %p65_p3 }
  0x17   : > { %p1223_p9 = por %p171_p6, %p59_p1  ;;  %p177_p10 = scmp.eq.s32.totalorder %s769_s25, 7 }
  0x18   : > { %s1228_s7 = scalar_select %p50_p7, %s1116_s20, %s52_s27  }
  0x19   : > { %p1230_p11 = por %p177_p10, %p65_p3  ;;  %p842_p12 = scmp.lt.s32.totalorder %s1128_s23, 8 }
  0x1a   : > { %1432 = sst [smem:[#allocation21_spill]] %s1228_s7  ;;  %s1236_s9 = sand.u32 1, %s1116_s20  }
  0x1b   : > { %s1433_s8 = scalar_select %p1230_p11, 1, 0 }
  0x1c   : > { %s1239_s10 = sshll.u32 %s1236_s9, 3  ;;  %s1242_s11 = sshll.u32 %s1124_s22, 7 }
  0x1d   : > { %1434 = sst [smem:[#allocation22_spill]] %s1433_s8  ;;  %p1246_p13 = pnand %p842_p12, %p1211_p4 }
  0x1e   : > { %s244_s13 = sand.u32 1, %s1128_s23   ;;  %s1436_s1 = sld [smem:[#allocation23_spill]] }
  0x1f   : > { %s248_s17 = scalar_lea.vmem [#allocation5], %s1239_s10  ;;  %p780_p0 = scmp.ge.s32.totalorder %s1128_s23, 1 }
  0x20   : > { %s255_s25 = sshll.u32 %s248_s17, 4  ;;  %p297_p1 = scmp.lt.s32.totalorder %s1128_s23, 9  ;;  %s256_s25 = int_to_ptr.vmem [resolvable:$true] %s255_s25 }
  0x21   : > { %s1258_s27 = scalar_lea.sflag [#allocation6], %s244_s13  ;;  %p900_p2 = pneg %p1246_p13 }
  0x22   : > { %s911_s28 = scalar_lea.vmem %s256_s25, 128  ;;  %s1130_s29 = smov [#allocation5]  }
  0x23   : > { %p912_p3 = scmp.ne.s32.totalorder %s256_s25, %s911_s28  ;;  %s916_s26 = sshll.u32 %s1130_s29, 4  ;;  %s917_s26 = int_to_ptr.vmem [resolvable:$false] %s916_s26 }
  0x24   : > { %s253_s16 = scalar_lea.hbm %s1436_s1, %s1242_s11  ;;  %s918_s14 = scalar_lea.vmem %s917_s26, 256 }
  0x25   : > { %p914_p4 = pnand %p912_p3, %p900_p2  ;;  %p919_p6 = scmp.lt.s32.totalorder %s256_s25, %s917_s26 }
  0x26   : > { %p920_p7 = scmp.lt.s32.totalorder %s918_s14, %s911_s28 }
  0x27   : > { %p915_p5 = pneg %p914_p4 }
  0x28   : > { %p921_p10 = por %p920_p7, %p919_p6 }
  0x2a   : > { %p922_p12 = pnand %p921_p10, %p915_p5 }
  0x2c   : > { %925 = shalt.err (!%p922_p12)
}
  0x2d   : > { %828 = dma.hbm_to_vmem [thread:$0]  (!%p1246_p13), %s253_s16, 128, %s256_s25, %s1258_s27  }
  0x2e   : > { %p1272_p3 = pnand %p780_p0, %p297_p1  ;;  %s235_s17 = scalar_lea.hbm %s1415_s0, %s1242_s11 }
  0x2f   : > { %s229_s28 = scalar_lea.vmem [#allocation2], %s1239_s10  ;;  %s271_s7 = scalar_lea.hbm %s1417_s2, %s1242_s11 }
  0x30   : > { %s237_s29 = sshll.u32 %s229_s28, 4  ;;  %s226_s20 = scalar_lea.sflag [#allocation3], %s1236_s9  ;;  %s238_s29 = int_to_ptr.vmem [resolvable:$true] %s237_s29 }
  0x31   : > { %s939_s8 = scalar_lea.vmem %s238_s29, 128  ;;  %s1131_s16 = smov [#allocation2]  }
  0x32   : > { %p940_p4 = scmp.ne.s32.totalorder %s238_s29, %s939_s8  ;;  %s944_s25 = sshll.u32 %s1131_s16, 4  ;;  %s945_s25 = int_to_ptr.vmem [resolvable:$false] %s944_s25 }
  0x33   : > { %s946_s18 = scalar_lea.vmem %s945_s25, 256  ;;  %p947_p5 = scmp.lt.s32.totalorder %s238_s29, %s945_s25 }
  0x34   : > { %p942_p0 = pnand %p940_p4, %p900_p2  ;;  %p948_p6 = scmp.lt.s32.totalorder %s946_s18, %s939_s8 }
  0x36   : > { %p943_p1 = pneg %p942_p0  ;;  %p949_p7 = por %p948_p6, %p947_p5 }
  0x38   : > { %p950_p10 = pnand %p949_p7, %p943_p1 }
  0x3a   : > { %953 = shalt.err (!%p950_p10)
}
  0x3b   : > { %825 = dma.hbm_to_vmem [thread:$0]  (!%p1246_p13), %s235_s17, 128, %s238_s29, %s226_s20  }
  0x3c   : > { %s266_s1 = scalar_lea.vmem [#allocation7], %s1239_s10  ;;  %s778_s15 = sshll.u32 %s1236_s9, 1 }
  0x3d   : > { %s273_s26 = sshll.u32 %s266_s1, 4  ;;  %s1132_s18 = smov [#allocation7]   ;;  %s274_s26 = int_to_ptr.vmem [resolvable:$true] %s273_s26 }
  0x3e   : > { %s967_s28 = scalar_lea.vmem %s274_s26, 128  ;;  %s972_s8 = sshll.u32 %s1132_s18, 4  ;;  %s973_s8 = int_to_ptr.vmem [resolvable:$false] %s972_s8 }
  0x3f   : > { %p968_p12 = scmp.ne.s32.totalorder %s274_s26, %s967_s28  ;;  %s974_s14 = scalar_lea.vmem %s973_s8, 256 }
  0x40   : > { %p975_p1 = scmp.lt.s32.totalorder %s274_s26, %s973_s8  ;;  %p976_p5 = scmp.lt.s32.totalorder %s974_s14, %s967_s28 }
  0x41   : > { %p970_p4 = pnand %p968_p12, %p900_p2 }
  0x42   : > { %p977_p6 = por %p976_p5, %p975_p1 }
  0x43   : > { %p971_p0 = pneg %p970_p4 }
  0x45   : > { %p978_p7 = pnand %p977_p6, %p971_p0 }
  0x47   : > { %981 = shalt.err (!%p978_p7)
}
  0x48   : > { %831 = dma.hbm_to_vmem [thread:$0]  (!%p1246_p13), %s271_s7, 128, %s274_s26, %s1258_s27  }
  0x49   : > { %s779_s17 = sshll.u32 %s1124_s22, 5  ;;  %s284_s1 = scalar_lea.vmem [#allocation8], %s778_s15 }
  0x4a   : > { %s290_s25 = scalar_lea.hbm %s1418_s3, %s779_s17  ;;  %s292_s28 = sshll.u32 %s284_s1, 4  ;;  %s293_s28 = int_to_ptr.vmem [resolvable:$true] %s292_s28 }
  0x4b   : > { %s281_s18 = scalar_lea.sflag [#allocation9], %s1236_s9  ;;  %s995_s8 = scalar_lea.vmem %s293_s28, 32 }
  0x4c   : > { %p996_p10 = scmp.ne.s32.totalorder %s293_s28, %s995_s8  ;;  %s1133_s11 = smov [#allocation8]  }
  0x4d   : > { %s1000_s14 = sshll.u32 %s1133_s11, 4  ;;  %s1001_s14 = int_to_ptr.vmem [resolvable:$false] %s1000_s14 }
  0x4e   : > { %p998_p12 = pnand %p996_p10, %p900_p2  ;;  %s1002_s20 = scalar_lea.vmem %s1001_s14, 64 }
  0x4f   : > { %p1003_p0 = scmp.lt.s32.totalorder %s293_s28, %s1001_s14  ;;  %p1004_p1 = scmp.lt.s32.totalorder %s1002_s20, %s995_s8 }
  0x50   : > { %p999_p4 = pneg %p998_p12 }
  0x51   : > { %p1005_p5 = por %p1004_p1, %p1003_p0 }
  0x53   : > { %p1006_p6 = pnand %p1005_p5, %p999_p4 }
  0x55   : > { %1009 = shalt.err (!%p1006_p6)
}
  0x56   : > { %834 = dma.hbm_to_vmem [thread:$0]  (!%p1246_p13), %s290_s25, 32, %s293_s28, %s281_s18  }
  0x57   : > { %301 = sbr.rel (%p1272_p3) target bundleno = 664 (0x298), region = 36  ;;  %s1317_s7 = sand.u32 (!%p1272_p3), 1, %s1112_s19  }
  0x58   : > { %s1320_s9 = sshll.u32 (!%p1272_p3), %s1317_s7, 3  ;;  %s304_s27 = scalar_lea.sflag (!%p1272_p3), [#allocation3], %s1317_s7 }
  0x59   : > { %s307_s26 = scalar_lea.vmem (!%p1272_p3), [#allocation2], %s1320_s9 }
  0x5c   : > { %1087 = dma.done.wait (%p1219_p8), %s304_s27, 128  }
  0x5d   : > { %1089 = vsyncadd (%p1219_p8), %s304_s27, 4294967168  ;;  %s312_s12 = sand.u32 1, %s1199_s24   ;;  %s316_s15 = scalar_lea.vmem [#allocation5], %s1320_s9 }
  0x5e   : > { %s313_s13 = scalar_lea.sflag [#allocation6], %s312_s12 }
  0x5f   : > { %1091 = dma.done.wait (%p1219_p8), %s313_s13, 256  }
  0x60   : > { %1093 = vsyncadd (%p1219_p8), %s313_s13, 4294967040  ;;  %s784_s10 = sshll.u32 %s1317_s7, 1  ;;  %s325_s17 = scalar_lea.vmem [#allocation7], %s1320_s9 }
  0x61   : > { %s331_s29 = scalar_lea.sflag [#allocation9], %s1317_s7  ;;  %s334_s16 = scalar_lea.vmem [#allocation8], %s784_s10 }
  0x62   : > { %1095 = dma.done.wait (%p1219_p8), %s331_s29, 32  }
  0x63   : > { %1097 = vsyncadd (%p1219_p8), %s331_s29, 4294967264  ;;  %v1134_v0 = vmov 0.0   ;;  %vm1135_vm0 = vmmov 0   ;;  %vm388_vm1 = vcmask 523264   ;;  %v383_v1 = vld [vmem:[%s316_s15] sm:$0xff]  ;;  %v381_v2 = vld [vmem:[%s307_s26] sm:$0xff] }
  0x64   : > { %800 = vmatprep.subr.mxu0 %v1134_v0  ;;  %802 = vmatprep.mubr.msk.f32.mxu0 %vm1135_vm0, %v1134_v0  ;;  %v382_v3 = vmul.f32 0.125, %v381_v2  ;;  %v385_v4 = vld [vmem:[%s334_s16] sm:$0x3]  ;;  %vm466_vm3 = vcmask 64512   ;;  %v384_v10 = vld [vmem:[%s325_s17] sm:$0xff]  ;;  %s792_s24 = sshll.u32 %s1120_s21, 7 }
  0x65   : > { %805 = vmatprep.subr.mxu1 %v1134_v0  ;;  %807 = vmatprep.mubr.msk.f32.mxu1 %vm1135_vm0, %v1134_v0  ;;  %v386_v5 = vunpack.c.0.s8 %v385_v4  ;;  %s380_s30 = scalar_lea.vmem [#allocation11], %s1320_s9  ;;  %s586_s18 = scalar_lea.hbm %s1420_s5, %s792_s24 }
  0x66   : > { %801 = vmatpush3.xpose.msk.msra.mxu0 %vm388_vm1, %v383_v1  ;;  %806 = vmatpush3.msra.mxu1 %v384_v10  ;;  %s588_s25 = sshll.u32 %s380_s30, 4  ;;  %s560_s8 = scalar_lea.sflag [#allocation12], %s1317_s7  ;;  %s589_s25 = int_to_ptr.vmem [resolvable:$true] %s588_s25 }
  0x67   : > { %vm387_vm2 = vcmp.ne.s32.totalorder %v386_v5, 0  ;;  %s1010_s11 = scalar_lea.vmem %s589_s25, 128  ;;  %s1136_s14 = smov [#allocation11]  }
  0x68   : > { %p1011_p8 = scmp.ne.s32.totalorder %s589_s25, %s1010_s11  ;;  %s1014_s20 = sshll.u32 %s1136_s14, 4  ;;  %s1015_s20 = int_to_ptr.vmem [resolvable:$false] %s1014_s20 }
  0x69   : > { %803 = vmatmul.mubr.msk.f32.vlgmr.msra.gmra.mxu0 %vm388_vm1, %v382_v3  ;;  %s1016_s27 = scalar_lea.vmem %s1015_s20, 256  ;;  %p1017_p3 = scmp.lt.s32.totalorder %s589_s25, %s1015_s20 }
  0x6a   : > { %p1012_p13 = pnand %p1011_p8, %p1223_p9  ;;  %p1018_p7 = scmp.lt.s32.totalorder %s1016_s27, %s1010_s11 }
  0x6c   : > { %p1013_p2 = pneg %p1012_p13  ;;  %p1019_p10 = por %p1018_p7, %p1017_p3 }
  0x6e   : > { %p1020_p12 = pnand %p1019_p10, %p1013_p2 }
 0x129   : > { %v461_v6 = vpop.f32.mrf.mxu0 }
 0x12a   : > { %v465_v7 = vsel %vm387_vm2, -1e+09, %v461_v6 }
 0x12b   : > { %v804_v8 = vpop.f32.mrf.mxu0  ;;  %v467_v9 = vsel %vm466_vm3, %v465_v7, -inf }
 0x12c   : > { %468 = vmax.xlane.f32.xlu0 %v467_v9 }
 0x1b5   : > { %v469_v11 = vpop.xlane.xlu0 %468 }
 0x1b6   : > { %v470_v12 = vsub.f32 %v465_v7, %v469_v11 }
 0x1b8   : > { %v471_v13 = vmul.f32 1.442695, %v470_v12 }
 0x1ba   : > { %894 = vpow2.f32 %v471_v13 }
 0x1c7   : > { %v895_v14 = vpop.eup %894 }
 0x1c8   : > { %808 = vmatmul.mubr.msk.f32.vlgmr.msra.gmra.mxu1 %vm466_vm3, %v895_v14  ;;  %v473_v15 = vsel %vm466_vm3, %v895_v14, 0.0 }
 0x1c9   : > { %474 = vadd.xlane.f32.xlu0 %v473_v15 }
 0x252   : > { %v475_v16 = vpop.xlane.xlu0 %474 }
 0x253   : > { %896 = vrcp.f32 %v475_v16 }
 0x260   : > { %v897_v17 = vpop.eup %896 }
 0x261   : > { %v552_v18 = vmul.f32 %v897_v17, %v895_v14 }
 0x263   : > { %553 = vst.msk [vmem:[%s380_s30] sm:$0xff] %vm466_vm3, %v552_v18 }
 0x264   : > { %1023 = shalt.err (!%p1020_p12)
}
 0x265   : > { %s1024_s26 = scalar_lea.hbm %s586_s18, 128  ;;  %s1028_s15 = scalar_lea.hbm %s1420_s5, 1024 }
 0x266   : > { %p1025_p4 = scmp.ne.s32.totalorder %s586_s18, %s1024_s26  ;;  %p1029_p5 = scmp.lt.s32.totalorder %s586_s18, %s1420_s5 }
 0x267   : > { %p1030_p6 = scmp.lt.s32.totalorder %s1028_s15, %s1024_s26 }
 0x268   : > { %p1026_p0 = pnand %p1025_p4, %p1223_p9 }
 0x269   : > { %p1031_p8 = por %p1030_p6, %p1029_p5 }
 0x26a   : > { %p1027_p1 = pneg %p1026_p0 }
 0x26c   : > { %p1032_p13 = pnand %p1031_p8, %p1027_p1 }
 0x26e   : > { %1035 = shalt.err (!%p1032_p13)
}
 0x26f   : > { %819 = dma.vmem_to_hbm [thread:$0]  (%p1223_p9), %s589_s25, 128, %s586_s18, %s560_s8  }
 0x270   : > { %s373_s29 = scalar_lea.vmem [#allocation10], %s1320_s9  ;;  %s1373_s28 = scalar_lea.hbm %s1419_s4, %s792_s24 }
 0x271   : > { %s574_s16 = sshll.u32 %s373_s29, 4  ;;  %s555_s11 = scalar_lea.sflag [#allocation4], %s1317_s7  ;;  %s575_s16 = int_to_ptr.vmem [resolvable:$true] %s574_s16 }
 0x272   : > { %s1036_s14 = scalar_lea.vmem %s575_s16, 128  ;;  %s1137_s9 = smov [#allocation10]  }
 0x273   : > { %p1037_p2 = scmp.ne.s32.totalorder %s575_s16, %s1036_s14  ;;  %s1040_s25 = sshll.u32 %s1137_s9, 4  ;;  %s1041_s25 = int_to_ptr.vmem [resolvable:$false] %s1040_s25 }
 0x274   : > { %s1042_s18 = scalar_lea.vmem %s1041_s25, 256  ;;  %p1043_p10 = scmp.lt.s32.totalorder %s575_s16, %s1041_s25 }
 0x275   : > { %p1038_p3 = pnand %p1037_p2, %p1223_p9  ;;  %p1044_p12 = scmp.lt.s32.totalorder %s1042_s18, %s1036_s14 }
 0x277   : > { %p1039_p7 = pneg %p1038_p3  ;;  %p1045_p4 = por %p1044_p12, %p1043_p10 }
 0x279   : > { %p1046_p0 = pnand %p1045_p4, %p1039_p7 }
 0x288   : > { %v546_v19 = vpop.f32.mrf.mxu1 }
 0x289   : > { %v550_v20 = vmul.f32 %v897_v17, %v546_v19 }
 0x28a   : > { %v809_v21 = vpop.f32.mrf.mxu1 }
 0x28b   : > { %551 = vst.msk [vmem:[%s373_s29] sm:$0xff] %vm388_vm1, %v550_v20 }
 0x28c   : > { %1049 = shalt.err (!%p1046_p0)
}
 0x28d   : > { %s1050_s21 = scalar_lea.hbm %s1373_s28, 128  ;;  %s1054_s8 = scalar_lea.hbm %s1419_s4, 1024 }
 0x28e   : > { %p1051_p1 = scmp.ne.s32.totalorder %s1373_s28, %s1050_s21  ;;  %p1055_p8 = scmp.lt.s32.totalorder %s1373_s28, %s1419_s4 }
 0x28f   : > { %p1056_p13 = scmp.lt.s32.totalorder %s1054_s8, %s1050_s21 }
 0x290   : > { %p1052_p5 = pnand %p1051_p1, %p1223_p9 }
 0x291   : > { %p1057_p2 = por %p1056_p13, %p1055_p8 }
 0x292   : > { %p1053_p6 = pneg %p1052_p5 }
 0x294   : > { %p1058_p3 = pnand %p1057_p2, %p1053_p6 }
 0x296   : > { %1061 = shalt.err (!%p1058_p3)
}
 0x297   : > { %818 = dma.vmem_to_hbm [thread:$0]  (%p1223_p9), %s575_s16, 128, %s1373_s28, %s555_s11  }
 0x298 PF: > { %s1438_s26 = sld [smem:[#allocation18_spill]]  ;;  %p843_p7 = scmp.ge.s32.totalorder %s1128_s23, 2 }
 0x29a   : > { %p836_p10 = pnand %p843_p7, %p1230_p11 }
 0x29c   : > { %p837_p12 = pneg %p836_p10 }
 0x29e   : > { %s600_s13 = sand.u32 1, %s1438_s26  }
 0x29f   : > { %s601_s15 = scalar_lea.sflag [#allocation4], %s600_s13 }
 0x2a0   : > { %1099 = dma.done.wait (%p837_p12), %s601_s15, 128  }
 0x2a1   : > { %1101 = vsyncadd (%p837_p12), %s601_s15, 4294967168  ;;  %s610_s10 = scalar_lea.sflag [#allocation12], %s600_s13 }
 0x2a2   : > { %1103 = dma.done.wait (%p837_p12), %s610_s10, 128  }
 0x2a3   : > { %1105 = vsyncadd (%p837_p12), %s610_s10, 4294967168  ;;  %s31_s23 = sadd.s32 1, %s1128_s23   ;;  %s1440_s6 = sld [smem:[#allocation19_spill]] }
 0x2a4   : > { %p28_p4 = scmp.ge.s32.totalorder %s31_s23, 10   ;;  %s1441_s20 = sld [smem:[#allocation21_spill]] }
 0x2a5   : > { %s1442_s17 = sld [smem:[#allocation20_spill]]  ;;  %s1443_s18 = smov %s1112_s19 }
 0x2a6   : > { %s1445_s21 = smov %s1124_s22 }
 0x2a7   :  { %30 = sbr.rel (!%p28_p4) target bundleno = 14 (0xe), region = 135 }
 0x2a9   : > { %s1444_s19 = smov %s1440_s6 }
 0x2ab   : > { %s1446_s22 = smov %s1442_s17 }
 0x2ac   :  { %615 = vsyncpa [#allocation3], 1 }
 0x2ad   :  { %617 = vsyncpa [#allocation3 + $0x1], 1 }
 0x2ae   :  { %618 = vsyncpa [#allocation6], 1 }
 0x2af   :  { %620 = vsyncpa [#allocation6 + $0x1], 1 }
 0x2b0   :  { %621 = vsyncpa [#allocation9], 1 }
 0x2b1   :  { %623 = vsyncpa [#allocation9 + $0x1], 1 }
 0x2b2   :  { %624 = vsyncpa [#allocation4], 1 }
 0x2b3   :  { %626 = vsyncpa [#allocation4 + $0x1], 1 }
 0x2b4   :  { %627 = vsyncpa [#allocation12], 1 }
 0x2b5   :  { %629 = vsyncpa [#allocation12 + $0x1], 1 }

</bundles_post_ra>
